<compile_context>
chip_gen: v7x
topology: tpu7x:2x2x1
jax: 0.10.0
libtpu: 0.0.40
codegen_flags: <defaults>
</compile_context>

<pallas_src>
import functools
import math

import jax
import jax.numpy as jnp
from jax.experimental import pallas as pl
from jax.experimental.pallas import tpu as pltpu


# ------------------------------ kernels ------------------------------------


def _layernorm_rowwise_kernel(x_ref, gamma_ref, beta_ref, o_ref, *, eps,
                              d_model, epilogue_f32):
    # x_ref: (TILE_ROWS, D); gamma_ref/beta_ref: (1, D).
    x = x_ref[...]
    xf = x.astype(jnp.float32)
    inv_d = jnp.float32(1.0 / d_model)

    # Two back-to-back XLU reductions; var = E[x^2] - mean^2 (biased, f32 acc).
    s1 = jnp.sum(xf, axis=-1, keepdims=True)
    s2 = jnp.sum(xf * xf, axis=-1, keepdims=True)
    mean = s1 * inv_d
    var = jnp.maximum(s2 * inv_d - mean * mean, 0.0)
    inv = jax.lax.rsqrt(var + jnp.float32(eps))

    if epilogue_f32:
        y = (xf - mean) * inv
        out = y * gamma_ref[...].astype(jnp.float32) + beta_ref[...].astype(jnp.float32)
    else:
        # bf16 epilogue (v6e/v7x): only the sums above accumulate in f32.
        cd = x.dtype
        y = (x - mean.astype(cd)) * inv.astype(cd)
        out = y * gamma_ref[...].astype(cd) + beta_ref[...].astype(cd)
    o_ref[...] = out.astype(o_ref.dtype)


def _layernorm_folded_kernel(x_ref, gamma_ref, beta_ref, seg_ref, segt_ref,
                             o_ref, *, eps, d_model):
    # Lane-dense path for d_model < 128.
    # x_ref: (TILE_ROWS, F) with F = k * d_model a multiple of 128; each kernel
    # row holds k logical rows side by side in the lane dim.
    # seg_ref: (F, k) one-hot segment matrix; segt_ref: (k, F) its transpose.
    xf = x_ref[...].astype(jnp.float32)
    seg = seg_ref[...]
    segt = segt_ref[...]
    inv_d = jnp.float32(1.0 / d_model)

    # Per-segment sums via the (otherwise idle) MXU: no cross-lane relayout.
    s1 = jnp.dot(xf, seg, preferred_element_type=jnp.float32)        # (T, k)
    s2 = jnp.dot(xf * xf, seg, preferred_element_type=jnp.float32)   # (T, k)
    mean = s1 * inv_d
    var = jnp.maximum(s2 * inv_d - mean * mean, 0.0)
    inv = jax.lax.rsqrt(var + jnp.float32(eps))

    # Broadcast per-segment stats back to every lane of their segment.
    mean_b = jnp.dot(mean, segt, preferred_element_type=jnp.float32)  # (T, F)
    inv_b = jnp.dot(inv, segt, preferred_element_type=jnp.float32)    # (T, F)

    gamma = gamma_ref[...].astype(jnp.float32)
    beta = beta_ref[...].astype(jnp.float32)
    o_ref[...] = ((xf - mean_b) * inv_b * gamma + beta).astype(o_ref.dtype)


# ---------------------------- sizing helpers --------------------------------


def _tpu_memory_profile():
    """(working_set_budget_bytes, vmem_limit_bytes) for this TPU generation."""
    vmem_bytes = None
    try:
        vmem_bytes = int(pltpu.get_tpu_info().vmem_capacity_bytes)
    except Exception:
        vmem_bytes = None
    if vmem_bytes is None:
        vmem_bytes = 64 * 1024 * 1024  # assume the smallest (v7x-class) VMEM

    if vmem_bytes >= 100 * 1024 * 1024:
        # v5e / v6e: 128 MiB VMEM per core. Big tiles amortize step overhead.
        return 56 * 1024 * 1024, 96 * 1024 * 1024
    # v7x-class: 64 MiB VMEM per core. Keep well under it once f32 temps count.
    return 26 * 1024 * 1024, 48 * 1024 * 1024


def _is_v6_or_newer():
    try:
        kind = jax.devices()[0].device_kind.lower()
    except Exception:
        return False
    return any(tag in kind for tag in ("v6", "v7"))


def _pick_tile_rows(rows, bytes_per_row, ws_budget_bytes, align):
    """Largest aligned row tile whose per-step working set fits the budget.

    Prefers >= 8 grid steps (pipelining on both v7x cores) and an exact divisor
    of `rows`, but never shrinks below half the target: a ragged last block is
    cheaper than tiny tiles (Pallas masks out-of-bounds writes).
    """
    hw_max = ws_budget_bytes // max(1, bytes_per_row)
    hw_max = max(align, (hw_max // align) * align)

    if rows <= hw_max and rows <= 8 * align:
        # Tiny problem: one full-extent block, single grid step.
        return rows

    target = min(hw_max, rows)
    if rows // 8 >= align:
        # >= 8 steps when rows permit; per-step overhead is negligible here.
        target = min(target, rows // 8)
    target = max(align, (target // align) * align)

    floor = max(align, (target // 2 // align) * align)
    t = target
    while t >= floor:
        if rows % t == 0:
            return t
        t -= align
    return target  # ragged last block; rows are independent, writes masked.


def _fold_factor(rows, d_model):
    """Rows folded into the lane dim so the stored last dim is >= 128."""
    if d_model >= 128 or d_model <= 0:
        return 1
    k0 = 128 // math.gcd(d_model, 128)
    if k0 <= 1:
        return 1
    max_m = max(1, 512 // (k0 * d_model))
    # Prefer the largest fold that still leaves >= 8 folded rows.
    for m in range(max_m, 0, -1):
        k = k0 * m
        if rows % k == 0 and rows // k >= 8:
            return k
    # Otherwise the smallest fold that divides rows exactly.
    for m in range(1, max_m + 1):
        k = k0 * m
        if rows % k == 0:
            return k
    return 1


# ------------------------------- wrapper -------------------------------------


def layernorm(x, gamma, beta, eps=1e-5):
    """x: (..., d_model); gamma, beta: (d_model,). Matches torch LayerNorm fwd."""
    orig_shape = x.shape
    d_model = orig_shape[-1]
    rows = 1
    for s in orig_shape[:-1]:
        rows *= s
    x2 = x.reshape(rows, d_model)

    itemsize = jnp.dtype(x.dtype).itemsize
    # Sublane alignment: 8 rows for 4-byte, 16 for 2-byte, 32 for 1-byte dtypes.
    align = max(8, 32 // max(1, itemsize))
    ws_budget, vmem_limit = _tpu_memory_profile()
    compiler_params = pltpu.CompilerParams(
        dimension_semantics=("parallel",),
        vmem_limit_bytes=vmem_limit,
    )

    fold = _fold_factor(rows, d_model)

    if fold > 1:
        # Lane-dense path: d_model < 128. Fold `fold` logical rows per kernel
        # row so stores are full-width.
        F = fold * d_model
        rows_f = rows // fold
        x_f = x2.reshape(rows_f, F)
        gamma_f = jnp.tile(gamma.reshape(-1), fold).reshape(1, F)
        beta_f = jnp.tile(beta.reshape(-1), fold).reshape(1, F)
        col = jnp.arange(F) // d_model
        seg = (col[:, None] == jnp.arange(fold)[None, :]).astype(jnp.float32)
        segt = jnp.transpose(seg)

        # Working set per folded row: in+out double-buffered + ~5 f32 temps
        # (x_f32, x*x, mean_b, inv_b, pre-cast result).
        bytes_per_row = 4 * F * itemsize + 5 * F * 4
        tile_rows = _pick_tile_rows(rows_f, bytes_per_row, ws_budget, align)
        grid = (pl.cdiv(rows_f, tile_rows),)

        kernel = functools.partial(_layernorm_folded_kernel, eps=eps,
                                   d_model=d_model)
        out = pl.pallas_call(
            kernel,
            out_shape=jax.ShapeDtypeStruct((rows_f, F), x.dtype),
            grid_spec=pltpu.PrefetchScalarGridSpec(
                num_scalar_prefetch=0,
                grid=grid,
                in_specs=[
                    pl.BlockSpec((tile_rows, F), lambda i: (i, 0)),
                    pl.BlockSpec((1, F), lambda i: (0, 0)),
                    pl.BlockSpec((1, F), lambda i: (0, 0)),
                    pl.BlockSpec((F, fold), lambda i: (0, 0)),
                    pl.BlockSpec((fold, F), lambda i: (0, 0)),
                ],
                out_specs=pl.BlockSpec((tile_rows, F), lambda i: (i, 0)),
            ),
            compiler_params=compiler_params,
        )(x_f, gamma_f, beta_f, seg, segt)
        return out.reshape(orig_shape)

    # Row-wise path (d_model >= 128, or fold does not divide rows).
    gamma2 = gamma.reshape(1, d_model)
    beta2 = beta.reshape(1, d_model)

    # Keep the epilogue in bf16 on v6e/v7x (native bf16 VALU); f32 otherwise.
    epilogue_f32 = not (x.dtype == jnp.bfloat16 and _is_v6_or_newer())

    # Working set per row: in+out double-buffered + ~3 f32 upcast temporaries
    # (x_f32, x*x, pre-cast result).
    bytes_per_row = 4 * d_model * itemsize + 3 * d_model * 4
    tile_rows = _pick_tile_rows(rows, bytes_per_row, ws_budget, align)
    grid = (pl.cdiv(rows, tile_rows),)

    kernel = functools.partial(_layernorm_rowwise_kernel, eps=eps,
                               d_model=d_model, epilogue_f32=epilogue_f32)
    out = pl.pallas_call(
        kernel,
        out_shape=jax.ShapeDtypeStruct((rows, d_model), x.dtype),
        grid_spec=pltpu.PrefetchScalarGridSpec(
            num_scalar_prefetch=0,
            grid=grid,
            in_specs=[
                pl.BlockSpec((tile_rows, d_model), lambda i: (i, 0)),
                pl.BlockSpec((1, d_model), lambda i: (0, 0)),
                pl.BlockSpec((1, d_model), lambda i: (0, 0)),
            ],
            out_specs=pl.BlockSpec((tile_rows, d_model), lambda i: (i, 0)),
        ),
        compiler_params=compiler_params,
    )(x2, gamma2, beta2)
    return out.reshape(orig_shape)


# -------------------------------- demo ---------------------------------------


if __name__ == "__main__":
    key = jax.random.PRNGKey(0)

    def ref_layernorm(x, gamma, beta, eps):
        mean = jnp.mean(x, axis=-1, keepdims=True)
        var = jnp.mean((x - mean) ** 2, axis=-1, keepdims=True)
        return gamma * ((x - mean) / jnp.sqrt(var + eps)) + beta

    # Small d_model (exercises the lane-dense folded path).
    batch, seq, d_model = 2, 8, 32
    x = jax.random.normal(key, (batch, seq, d_model), dtype=jnp.float32)
    gamma = jnp.ones((d_model,), dtype=jnp.float32)
    beta = jnp.zeros((d_model,), dtype=jnp.float32)
    out = layernorm(x, gamma, beta, eps=1e-5)
    out = jax.block_until_ready(out)
    ref = ref_layernorm(x, gamma, beta, 1e-5)
    assert jnp.allclose(out, ref, atol=1e-4, rtol=1e-4), "mismatch (folded path)"

    # Lane-dense d_model (exercises the row-wise path).
    d2 = 128
    x2 = jax.random.normal(jax.random.PRNGKey(1), (batch, seq, d2), dtype=jnp.float32)
    g2 = jnp.ones((d2,), dtype=jnp.float32)
    b2 = jnp.zeros((d2,), dtype=jnp.float32)
    out2 = layernorm(x2, g2, b2, eps=1e-5)
    out2 = jax.block_until_ready(out2)
    ref2 = ref_layernorm(x2, g2, b2, 1e-5)
    assert jnp.allclose(out2, ref2, atol=1e-4, rtol=1e-4), "mismatch (rowwise path)"

    print("KERNEL_OK")
</pallas_src>

<mosaic_0001>
module attributes {stable_mosaic.version = 11 : i64} {
  func.func @_layernorm_folded_kernel(%arg0: i32, %arg1: memref<4x128xf32, #tpu.memory_space<vmem>>, %arg2: memref<1x128xf32, #tpu.memory_space<vmem>>, %arg3: memref<1x128xf32, #tpu.memory_space<vmem>>, %arg4: memref<128x4xf32, #tpu.memory_space<vmem>>, %arg5: memref<4x128xf32, #tpu.memory_space<vmem>>, %arg6: memref<4x128xf32, #tpu.memory_space<vmem>>) attributes {dimension_semantics = [#tpu.dimension_semantics<parallel>], iteration_bounds = array<i64: 1>, scalar_prefetch = 0 : i64, scratch_operands = 0 : i64, tpu.core_type = #tpu.core_type<tc>, window_params = [{transform_indices = @transform_0, window_bounds = array<i64: 4, 128>}, {pipeline_mode = #tpu.pipeline_mode<synchronous>, transform_indices = @transform_1, window_bounds = array<i64: 1, 128>}, {pipeline_mode = #tpu.pipeline_mode<synchronous>, transform_indices = @transform_2, window_bounds = array<i64: 1, 128>}, {pipeline_mode = #tpu.pipeline_mode<synchronous>, transform_indices = @transform_3, window_bounds = array<i64: 128, 4>}, {pipeline_mode = #tpu.pipeline_mode<synchronous>, transform_indices = @transform_4, window_bounds = array<i64: 4, 128>}, {transform_indices = @transform_5, window_bounds = array<i64: 4, 128>}]} {
    %c0 = arith.constant 0 : index
    %c0_0 = arith.constant 0 : index
    %0 = vector.load %arg1[%c0, %c0_0] : memref<4x128xf32, #tpu.memory_space<vmem>>, vector<4x128xf32>
    %c0_1 = arith.constant 0 : index
    %c0_2 = arith.constant 0 : index
    %1 = vector.load %arg4[%c0_1, %c0_2] : memref<128x4xf32, #tpu.memory_space<vmem>>, vector<128x4xf32>
    %c0_3 = arith.constant 0 : index
    %c0_4 = arith.constant 0 : index
    %2 = vector.load %arg5[%c0_3, %c0_4] : memref<4x128xf32, #tpu.memory_space<vmem>>, vector<4x128xf32>
    %cst = arith.constant dense<0.000000e+00> : vector<4x4xf32>
    %3 = tpu.matmul %0, %1, %cst {dimension_numbers = #tpu.dot_dimension_numbers<[1], [0], [0], [1], [0, 0, 1, 1], [], []>} : vector<4x128xf32>, vector<128x4xf32>, vector<4x4xf32> -> vector<4x4xf32>
    %4 = arith.mulf %0, %0 : vector<4x128xf32>
    %cst_5 = arith.constant dense<0.000000e+00> : vector<4x4xf32>
    %5 = tpu.matmul %4, %1, %cst_5 {dimension_numbers = #tpu.dot_dimension_numbers<[1], [0], [0], [1], [0, 0, 1, 1], [], []>} : vector<4x128xf32>, vector<128x4xf32>, vector<4x4xf32> -> vector<4x4xf32>
    %cst_6 = arith.constant 3.125000e-02 : f32
    %6 = vector.broadcast %cst_6 : f32 to vector<4x4xf32>
    %7 = arith.mulf %3, %6 : vector<4x4xf32>
    %cst_7 = arith.constant 3.125000e-02 : f32
    %8 = vector.broadcast %cst_7 : f32 to vector<4x4xf32>
    %9 = arith.mulf %5, %8 : vector<4x4xf32>
    %10 = arith.mulf %7, %7 : vector<4x4xf32>
    %11 = arith.subf %9, %10 : vector<4x4xf32>
    %cst_8 = arith.constant 0.000000e+00 : f32
    %12 = vector.broadcast %cst_8 : f32 to vector<4x4xf32>
    %13 = arith.maximumf %11, %12 : vector<4x4xf32>
    %cst_9 = arith.constant 9.99999974E-6 : f32
    %14 = vector.broadcast %cst_9 : f32 to vector<4x4xf32>
    %15 = arith.addf %13, %14 : vector<4x4xf32>
    %16 = math.rsqrt %15 : vector<4x4xf32>
    %cst_10 = arith.constant dense<0.000000e+00> : vector<4x128xf32>
    %17 = tpu.matmul %7, %2, %cst_10 {dimension_numbers = #tpu.dot_dimension_numbers<[1], [0], [0], [1], [0, 0, 1, 1], [], []>} : vector<4x4xf32>, vector<4x128xf32>, vector<4x128xf32> -> vector<4x128xf32>
    %cst_11 = arith.constant dense<0.000000e+00> : vector<4x128xf32>
    %18 = tpu.matmul %16, %2, %cst_11 {dimension_numbers = #tpu.dot_dimension_numbers<[1], [0], [0], [1], [0, 0, 1, 1], [], []>} : vector<4x4xf32>, vector<4x128xf32>, vector<4x128xf32> -> vector<4x128xf32>
    %c0_12 = arith.constant 0 : index
    %c0_13 = arith.constant 0 : index
    %19 = vector.load %arg2[%c0_12, %c0_13] : memref<1x128xf32, #tpu.memory_space<vmem>>, vector<1x128xf32>
    %c0_14 = arith.constant 0 : index
    %c0_15 = arith.constant 0 : index
    %20 = vector.load %arg3[%c0_14, %c0_15] : memref<1x128xf32, #tpu.memory_space<vmem>>, vector<1x128xf32>
    %21 = arith.subf %0, %17 : vector<4x128xf32>
    %22 = arith.mulf %21, %18 : vector<4x128xf32>
    %23 = vector.broadcast %19 : vector<1x128xf32> to vector<4x128xf32>
    %24 = arith.mulf %22, %23 : vector<4x128xf32>
    %25 = vector.broadcast %20 : vector<1x128xf32> to vector<4x128xf32>
    %26 = arith.addf %24, %25 : vector<4x128xf32>
    %c0_16 = arith.constant 0 : index
    %c0_17 = arith.constant 0 : index
    %27 = vector.load %arg6[%c0_16, %c0_17] : memref<4x128xf32, #tpu.memory_space<vmem>>, vector<4x128xf32>
    tpu.vector_store %arg6[%c0_16, %c0_17], %26 {strides = array<i32>} : memref<4x128xf32, #tpu.memory_space<vmem>>, vector<4x128xf32>,
    return
  }
  func.func @transform_0(%arg0: i32) -> (i32, i32) {
    %c0_i32 = arith.constant 0 : i32
    %c0_i32_0 = arith.constant 0 : i32
    return %arg0, %c0_i32 : i32, i32
  }
  func.func @transform_1(%arg0: i32) -> (i32, i32) {
    %c0_i32 = arith.constant 0 : i32
    %c0_i32_0 = arith.constant 0 : i32
    %c0_i32_1 = arith.constant 0 : i32
    return %c0_i32, %c0_i32_0 : i32, i32
  }
  func.func @transform_2(%arg0: i32) -> (i32, i32) {
    %c0_i32 = arith.constant 0 : i32
    %c0_i32_0 = arith.constant 0 : i32
    %c0_i32_1 = arith.constant 0 : i32
    return %c0_i32, %c0_i32_0 : i32, i32
  }
  func.func @transform_3(%arg0: i32) -> (i32, i32) {
    %c0_i32 = arith.constant 0 : i32
    %c0_i32_0 = arith.constant 0 : i32
    %c0_i32_1 = arith.constant 0 : i32
    return %c0_i32, %c0_i32_0 : i32, i32
  }
  func.func @transform_4(%arg0: i32) -> (i32, i32) {
    %c0_i32 = arith.constant 0 : i32
    %c0_i32_0 = arith.constant 0 : i32
    %c0_i32_1 = arith.constant 0 : i32
    return %c0_i32, %c0_i32_0 : i32, i32
  }
  func.func @transform_5(%arg0: i32) -> (i32, i32) {
    %c0_i32 = arith.constant 0 : i32
    %c0_i32_0 = arith.constant 0 : i32
    return %arg0, %c0_i32 : i32, i32
  }
}

</mosaic_0001>

<bundles_post_ra>
// kernel: tpu_custom_call.1
= control target key start
LH: loop header
LB: loop body
LE: loop exit
PB: predicated region body
PF: predicated region fallthrough
CT: control target
= control target key end

     0   :  { %v573_v3 = vmov 0.0|0.0   ;;  %vm574_vm0 = vmmov 0   ;;  %v575_v6 = vmov 0.0   ;;  %s683_s0 = inlined_call_operand.vmem [shape: f32[4,128], index: 0, kind: input, shape index: {}]   ;;  %s684_s1 = inlined_call_operand.vmem [shape: f32[1,128], index: 1, kind: input, shape index: {}]   ;;  %s685_s2 = inlined_call_operand.vmem [shape: f32[1,128], index: 2, kind: input, shape index: {}]   ;;  %s686_s3 = inlined_call_operand.vmem [shape: f32[128,4], index: 3, kind: input, shape index: {}]   ;;  %s687_s4 = inlined_call_operand.vmem [shape: f32[4,128], index: 4, kind: input, shape index: {}]   ;;  %s688_s5 = inlined_call_operand.hbm [shape: f32[4,128], index: 5, kind: output, shape index: {}]  }
   0x1   :  { %v22_v0 = vld [vmem:[%s686_s3] sm:$0xff]  ;;  %v23_v1 = vld [vmem:[%s686_s3 + $0x8] sm:$0xff]  ;;  %v24_v2 = vld [vmem:[%s686_s3 + $0x10] sm:$0xff]  ;;  %495 = vmatprep.subr.bf16.mxu0 %v573_v3  ;;  %519 = vmatprep.subr.bf16.mxu1 %v573_v3 }
   0x2   :  { %v496_v4 = vpack.c.bf16 %v23_v1, %v22_v0  ;;  %v25_v5 = vld [vmem:[%s686_s3 + $0x18] sm:$0xff]  ;;  %447 = vmatprep.mubr.msk.f32.mxu0 %vm574_vm0, %v575_v6  ;;  %482 = vmatprep.mubr.msk.f32.mxu1 %vm574_vm0, %v575_v6  ;;  %v26_v8 = vld [vmem:[%s686_s3 + $0x20] sm:$0xff]  ;;  %v27_v9 = vld [vmem:[%s686_s3 + $0x28] sm:$0xff] }
   0x3   :  { %v499_v7 = vpack.c.bf16 %v25_v5, %v24_v2 }
   0x4   :  { %497 = vmatpush3.bf16.msra.mxu0 %v496_v4  ;;  %521 = vmatpush3.bf16.msra.mxu1 %v496_v4 }
   0x5   :  { %498 = vmatprep.subr.bf16.mxu0 %v573_v3  ;;  %522 = vmatprep.subr.bf16.mxu1 %v573_v3 }
   0x6   :  { %10 = vsyncpa [#allocation3], 0  ;;  %v502_v10 = vpack.c.bf16 %v27_v9, %v26_v8  ;;  %v28_v11 = vld [vmem:[%s686_s3 + $0x30] sm:$0xff]  ;;  %v29_v12 = vld [vmem:[%s686_s3 + $0x38] sm:$0xff]  ;;  %vm191_vm1 = vcmask 1043456   ;;  %vm187_vm2 = vcmask 31744  }
   0x7   :  { %v505_v13 = vpack.c.bf16 %v29_v12, %v28_v11  ;;  %v30_v14 = vld [vmem:[%s686_s3 + $0x40] sm:$0xff]  ;;  %v31_v15 = vld [vmem:[%s686_s3 + $0x48] sm:$0xff]  ;;  %v32_v17 = vld [vmem:[%s686_s3 + $0x50] sm:$0xff]  ;;  %s576_s30 = smov [#allocation2]  }
   0x8   :  { %500 = vmatpush3.bf16.msra.mxu0 %v499_v7  ;;  %524 = vmatpush3.bf16.msra.mxu1 %v499_v7  ;;  %v508_v16 = vpack.c.bf16 %v31_v15, %v30_v14  ;;  %v33_v18 = vld [vmem:[%s686_s3 + $0x58] sm:$0xff]  ;;  %v34_v20 = vld [vmem:[%s686_s3 + $0x60] sm:$0xff]  ;;  %v35_v21 = vld [vmem:[%s686_s3 + $0x68] sm:$0xff]  ;;  %s363_s6 = sshll.u32 %s576_s30, 4  ;;  %s364_s6 = int_to_ptr.vmem [resolvable:$true] %s363_s6 }
   0x9   :  { %501 = vmatprep.subr.bf16.mxu0 %v573_v3  ;;  %525 = vmatprep.subr.bf16.mxu1 %v573_v3  ;;  %v511_v19 = vpack.c.bf16 %v33_v18, %v32_v17  ;;  %v514_v22 = vpack.c.bf16 %v35_v21, %v34_v20  ;;  %v36_v23 = vld [vmem:[%s686_s3 + $0x70] sm:$0xff]  ;;  %v37_v24 = vld [vmem:[%s686_s3 + $0x78] sm:$0xff]  ;;  %v21_v26 = vld [vmem:[%s683_s0] sm:$0xf]  ;;  %s549_s7 = scalar_lea.vmem %s364_s6, 64  ;;  %p554_p1 = scmp.lt.s32.totalorder %s364_s6, %s364_s6 }
   0xa   :  { %v517_v25 = vpack.c.bf16 %v37_v24, %v36_v23  ;;  %v109_v27 = vmul.f32 %v21_v26, %v21_v26  ;;  %v38_v28 = vld [vmem:[%s687_s4] sm:$0xf]  ;;  %p550_p0 = scmp.ne.s32.totalorder %s364_s6, %s549_s7  ;;  %p555_p2 = scmp.lt.s32.totalorder %s549_s7, %s549_s7 }
   0xb   :  { %v375_v44 = vld [vmem:[%s684_s1] ss:$0 sm:$0xff] }
   0xc   :  { %503 = vmatpush3.bf16.msra.mxu0 %v502_v10  ;;  %527 = vmatpush3.bf16.msra.mxu1 %v502_v10  ;;  %v376_v47 = vld [vmem:[%s685_s2] ss:$0 sm:$0xff]  ;;  %p556_p3 = por %p555_p2, %p554_p1 }
   0xd   :  { %504 = vmatprep.subr.bf16.mxu0 %v573_v3  ;;  %528 = vmatprep.subr.bf16.mxu1 %v573_v3 }
   0xe   :  { %p557_p4 = pnand %p556_p3, %p550_p0 }
  0x10   :  { %506 = vmatpush3.bf16.msra.mxu0 %v505_v13  ;;  %530 = vmatpush3.bf16.msra.mxu1 %v505_v13 }
  0x11   :  { %507 = vmatprep.subr.bf16.mxu0 %v573_v3  ;;  %531 = vmatprep.subr.bf16.mxu1 %v573_v3 }
  0x14   :  { %509 = vmatpush3.bf16.msra.mxu0 %v508_v16  ;;  %533 = vmatpush3.bf16.msra.mxu1 %v508_v16 }
  0x15   :  { %510 = vmatprep.subr.bf16.mxu0 %v573_v3  ;;  %534 = vmatprep.subr.bf16.mxu1 %v573_v3 }
  0x18   :  { %512 = vmatpush3.bf16.msra.mxu0 %v511_v19  ;;  %536 = vmatpush3.bf16.msra.mxu1 %v511_v19 }
  0x19   :  { %513 = vmatprep.subr.bf16.mxu0 %v573_v3  ;;  %537 = vmatprep.subr.bf16.mxu1 %v573_v3 }
  0x1c   :  { %515 = vmatpush3.bf16.msra.mxu0 %v514_v22  ;;  %539 = vmatpush3.bf16.msra.mxu1 %v514_v22 }
  0x1d   :  { %516 = vmatprep.subr.bf16.mxu0 %v573_v3  ;;  %540 = vmatprep.subr.bf16.mxu1 %v573_v3 }
  0x20   :  { %518 = vmatpush3.bf16.msra.mxu0 %v517_v25  ;;  %542 = vmatpush3.bf16.msra.mxu1 %v517_v25 }
  0x21   :  { %485 = vmatprep.subr.mxu0 %v575_v6  ;;  %490 = vmatprep.subr.mxu1 %v575_v6 }
  0x23   :  { %448 = vmatmul.mubr.f32.vlgmr.msra.gmra.mrb[0].mxu0 %v21_v26  ;;  %483 = vmatmul.mubr.f32.vlgmr.msra.gmra.mrb[0].mxu1 %v109_v27 }
  0x24   :  { %487 = vmatprep.mubr.msk.f32.mxu0 %vm574_vm0, %v575_v6  ;;  %492 = vmatprep.mubr.msk.f32.mxu1 %vm574_vm0, %v575_v6 }
  0x25   :  { %486 = vmatpush3.msk.msra.mxu0 %vm191_vm1, %v38_v28  ;;  %491 = vmatpush3.msk.msra.mxu1 %vm191_vm1, %v38_v28 }
  0xf6   :  { %v105_v29 = vpop.f32.mrb[0].mxu0  ;;  %v176_v30 = vpop.f32.mrb[0].mxu1 }
  0xf7   :  { %v180_v31 = vmul.f32 0.03125, %v105_v29  ;;  %v449_v32 = vpop.f32.mrb[1].mxu0  ;;  %v181_v33 = vmul.f32 0.03125, %v176_v30  ;;  %v484_v34 = vpop.f32.mrb[1].mxu1 }
  0xf9   :  { %v182_v35 = vmul.f32 %v180_v31, %v180_v31  ;;  %488 = vmatmul.mubr.msk.f32.vlgmr.msra.gmra.mrb[2].mxu0 %vm187_vm2, %v180_v31 }
  0xfb   :  { %v183_v36 = vsub.f32 %v181_v33, %v182_v35 }
  0xfd   :  { %v184_v37 = vmax.f32 %v183_v36, 0.0 }
  0xff   :  { %v185_v38 = vadd.f32 1e-05, %v184_v37 }
 0x101   :  { %547 = vrsqrt.f32 %v185_v38 }
 0x10b   :  { %v548_v39 = vpop.eup %547 }
 0x10c   :  { %493 = vmatmul.mubr.msk.f32.vlgmr.msra.gmra.mrb[2].mxu1 %vm187_vm2, %v548_v39 }
 0x1cc   :  { %v261_v40 = vpop.f32.mrb[2].mxu0 }
 0x1cd   :  { %v489_v41 = vpop.f32.mrb[3].mxu0  ;;  %v340_v42 = vsub.f32 %v21_v26, %v261_v40 }
 0x1df   :  { %v334_v43 = vpop.f32.mrb[2].mxu1 }
 0x1e0   :  { %v341_v45 = vmul.f32 %v340_v42, %v334_v43  ;;  %v494_v46 = vpop.f32.mrb[3].mxu1 }
 0x1e2   :  { %v348_v48 = vmul.f32 %v375_v44, %v341_v45 }
 0x1e4   :  { %v355_v49 = vadd.f32 %v376_v47, %v348_v48 }
 0x1e6   :  { %356 = vst [vmem:[#allocation2] sm:$0xf] %v355_v49 }
 0x1e7   :  { %560 = shalt.err (!%p557_p4)
}
 0x1e8   :  { %s561_s9 = scalar_lea.hbm %s688_s5, 64 }
 0x1e9   :  { %p562_p5 = scmp.ne.s32.totalorder %s688_s5, %s561_s9  ;;  %p565_p6 = scmp.lt.u32.totalorder %s561_s9, %s688_s5 }
 0x1eb   :  { %p567_p7 = pnand %p565_p6, %p562_p5 }
 0x1ed   :  { %570 = shalt.err (!%p567_p7)
}
 0x1ee   :  { %366 = dma.vmem_to_hbm [thread:$0]  %s364_s6, 64, %s688_s5, [#allocation3]  }
 0x1ef   :  { %571 = dma.done.wait [#allocation3], 64  }
 0x1f0   :  { %572 = vsyncadd [#allocation3], 4294967232 }
 0x1f1   :  { %370 = vsyncpa [#allocation3], 1 }

</bundles_post_ra>
